<compile_context>
chip_gen: v7x
topology: tpu7x:2x2x1
jax: 0.10.0
libtpu: 0.0.40
codegen_flags: <defaults>
</compile_context>

<pallas_src>
import functools

import jax
import jax.numpy as jnp
import numpy as np
from jax import lax
from jax.experimental import pallas as pl
from jax.experimental.pallas import tpu as pltpu

NEG_SLOPE = 0.2                 # LeakyReLU negative slope ('lrelu')
IN_EPS = 1e-5                   # torch.nn.InstanceNorm2d default eps
VMEM_LIMIT = 32 * 1024 * 1024   # explicit scoped-VMEM budget (safe on v5e/v6e/v7x)


# ---------------------------- Pallas kernel ----------------------------

def _conv_block_kernel(x_ref, w_ref, b_ref, o_ref, *,
                       apply_bias, apply_norm, apply_act):
    """One (image n, tap t) grid step of a Conv2dBlock.

    x_ref: (Cin, M)   tap-t slab of image n  (M = Ho*Wo on the lane axis)
    w_ref: (Cout, Cin) tap-t weight matrix
    b_ref: (Cout, 1)   bias column (zeros when the conv has no bias)
    o_ref: (Cout, M)   output block of image n; resident across the tap axis
                       and used directly as the f32 accumulator.
    """
    t = pl.program_id(1)
    part = jnp.dot(w_ref[...], x_ref[...], preferred_element_type=jnp.float32)

    @pl.when(t == 0)
    def _init():
        o_ref[...] = part

    @pl.when(t > 0)
    def _accumulate():
        o_ref[...] = o_ref[...] + part

    @pl.when(t == pl.num_programs(1) - 1)
    def _finalize():
        acc = o_ref[...]
        if apply_bias:
            acc = acc + b_ref[...]
        if apply_norm:
            # InstanceNorm2d(affine=False): each row is one (n, c) plane.
            mean = jnp.mean(acc, axis=-1, keepdims=True)
            xc = acc - mean
            var = jnp.mean(xc * xc, axis=-1, keepdims=True)
            acc = xc * lax.rsqrt(var + IN_EPS)
        if apply_act:
            acc = jnp.where(acc >= 0, acc, NEG_SLOPE * acc)
        o_ref[...] = acc


# ---------------------------- conv block (pad + glue + pallas_call) ----------------------------

def _reflect_pad(x, p):
    if p == 0:
        return x
    return jnp.pad(x, ((0, 0), (0, 0), (p, p), (p, p)), mode="reflect")


def conv2d_block(x, weight, bias, stride, padding, apply_norm, apply_act,
                 compute_dtype=jnp.float32):
    """ReflectionPad -> Conv2d -> [InstanceNorm] -> [LeakyReLU]; NCHW in/out."""
    Cout, Cin, k, _ = weight.shape
    N, _, H, W = x.shape
    xp = _reflect_pad(x, padding)
    Hp, Wp = H + 2 * padding, W + 2 * padding
    Ho = (Hp - k) // stride + 1
    Wo = (Wp - k) // stride + 1
    M = Ho * Wo
    T = k * k

    # Tap slabs: shifts[t = kh*k + kw, n, ci, :] = xp[n, ci, kh::s, kw::s] flat.
    # Pure strided slices + stack: no XLA transpose, minor (H, W) layout kept.
    slabs = []
    for kh in range(k):
        for kw in range(k):
            slabs.append(lax.slice(
                xp, (0, 0, kh, kw),
                (N, Cin, kh + stride * (Ho - 1) + 1, kw + stride * (Wo - 1) + 1),
                (1, 1, stride, stride)))
    shifts = jnp.stack(slabs, axis=0).reshape(T, N, Cin, M).astype(compute_dtype)

    # Per-tap weight matrices (T, Cout, Cin); tap order matches kh*k + kw.
    w_t = weight.reshape(Cout, Cin, T).transpose(2, 0, 1).astype(compute_dtype)

    b_col = bias if bias is not None else jnp.zeros((Cout,), jnp.float32)
    b_col = b_col.reshape(Cout, 1).astype(jnp.float32)

    out = pl.pallas_call(
        functools.partial(_conv_block_kernel,
                          apply_bias=bias is not None,
                          apply_norm=apply_norm,
                          apply_act=apply_act),
        out_shape=jax.ShapeDtypeStruct((N, Cout, M), jnp.float32),
        grid=(N, T),
        in_specs=[
            pl.BlockSpec((None, None, Cin, M), lambda n, t: (t, n, 0, 0)),
            pl.BlockSpec((None, Cout, Cin), lambda n, t: (t, 0, 0)),
            pl.BlockSpec((Cout, 1), lambda n, t: (0, 0)),
        ],
        out_specs=pl.BlockSpec((None, Cout, M), lambda n, t: (n, 0, 0)),
        compiler_params=pltpu.CompilerParams(
            dimension_semantics=("parallel", "arbitrary"),
            vmem_limit_bytes=VMEM_LIMIT),
    )(shifts, w_t, b_col)

    return out.reshape(N, Cout, Ho, Wo)


# ---------------------------- D_NET ----------------------------

def init_d_net_params(key, input_nc=3, ndf=8, block_num=3):
    weights = []
    dim_in, dim_out = input_nc, ndf
    for _ in range(block_num):
        key, sub = jax.random.split(key)
        w = jax.random.normal(sub, (dim_out, dim_in, 4, 4), jnp.float32) / np.sqrt(
            dim_in * 16)
        weights.append(w)
        dim_in = dim_out
        dim_out = min(dim_in * 2, ndf * 8)
    key, k1, k2 = jax.random.split(key, 3)
    pre_w = jax.random.normal(k1, (1, dim_in, 4, 4), jnp.float32) / np.sqrt(dim_in * 16)
    pre_b = 0.01 * jax.random.normal(k2, (1,), jnp.float32)
    return {"block_ws": weights, "pre_w": pre_w, "pre_b": pre_b}


@functools.partial(jax.jit, static_argnames=("compute_dtype",))
def d_net_forward(params, x, c=None, compute_dtype=jnp.float32):
    if c is not None:
        # TODO(synk): conditional branch (c_con1 / CBINorm2d / c_con2) skipped:
        # CBINorm2d is not defined in the reference source; forward(x, c=None)
        # returns c_pre=None.
        raise NotImplementedError("conditional (c) branch not implemented")
    h = x
    for i, w in enumerate(params["block_ws"]):
        # block 0: conv -> lrelu ; blocks 1..: conv -> InstanceNorm -> lrelu
        h = conv2d_block(h, w, None, stride=2, padding=1,
                         apply_norm=(i > 0), apply_act=True,
                         compute_dtype=compute_dtype)
    x_code = h
    pre = conv2d_block(x_code, params["pre_w"], params["pre_b"],
                       stride=1, padding=1, apply_norm=False, apply_act=False,
                       compute_dtype=compute_dtype)
    c_pre = None
    return pre, c_pre, x_code


# ---------------------------- pure-JAX reference ----------------------------

def _ref_conv(x, w, b, stride, padding):
    xp = _reflect_pad(x, padding)
    out = lax.conv_general_dilated(
        xp, w, (stride, stride), "VALID",
        dimension_numbers=("NCHW", "OIHW", "NCHW"),
        precision=lax.Precision.HIGHEST)
    if b is not None:
        out = out + b.reshape(1, -1, 1, 1)
    return out


def _ref_forward(params, x):
    h = x
    for i, w in enumerate(params["block_ws"]):
        h = _ref_conv(h, w, None, 2, 1)
        if i > 0:
            mean = h.mean(axis=(2, 3), keepdims=True)
            var = ((h - mean) ** 2).mean(axis=(2, 3), keepdims=True)
            h = (h - mean) / jnp.sqrt(var + IN_EPS)
        h = jnp.where(h >= 0, h, NEG_SLOPE * h)
    x_code = h
    pre = _ref_conv(x_code, params["pre_w"], params["pre_b"], 1, 1)
    return pre, x_code


if __name__ == "__main__":
    key = jax.random.PRNGKey(0)
    key, kx = jax.random.split(key)
    x = jax.random.normal(kx, (2, 3, 16, 16), jnp.float32)
    params = init_d_net_params(key, input_nc=3, ndf=8, block_num=3)

    # float32 path
    pre, c_pre, x_code = jax.block_until_ready(d_net_forward(params, x))

    assert pre.shape == (2, 1, 1, 1), pre.shape
    assert x_code.shape == (2, 32, 2, 2), x_code.shape
    assert c_pre is None

    ref_pre, ref_code = _ref_forward(params, x)
    assert np.allclose(np.asarray(pre), np.asarray(ref_pre), atol=1e-3, rtol=1e-3)
    assert np.allclose(np.asarray(x_code), np.asarray(ref_code), atol=1e-3, rtol=1e-3)

    # bfloat16 MXU-input path (f32 accumulation + f32 epilogue), v6e-oriented.
    pre_bf, _, code_bf = jax.block_until_ready(
        d_net_forward(params, x, compute_dtype=jnp.bfloat16))
    assert pre_bf.shape == (2, 1, 1, 1) and code_bf.shape == (2, 32, 2, 2)
    assert np.allclose(np.asarray(pre_bf), np.asarray(ref_pre), atol=5e-2, rtol=5e-2)
    assert np.allclose(np.asarray(code_bf), np.asarray(ref_code), atol=5e-2, rtol=5e-2)

    print("KERNEL_OK")
</pallas_src>

<mosaic_0001>
module attributes {stable_mosaic.version = 11 : i64} {
  func.func @_conv_block_kernel(%arg0: i32, %arg1: i32, %arg2: memref<1x1x3x64xf32, #tpu.memory_space<vmem>>, %arg3: memref<1x8x3xf32, #tpu.memory_space<vmem>>, %arg4: memref<8x1xf32, #tpu.memory_space<vmem>>, %arg5: memref<1x8x64xf32, #tpu.memory_space<vmem>>) attributes {dimension_semantics = [#tpu.dimension_semantics<parallel>, #tpu.dimension_semantics<arbitrary>], iteration_bounds = array<i64: 2, 16>, scalar_prefetch = 0 : i64, scratch_operands = 0 : i64, tpu.core_type = #tpu.core_type<tc>, window_params = [{transform_indices = @transform_0, window_bounds = array<i64: 1, 1, 3, 64>}, {transform_indices = @transform_1, window_bounds = array<i64: 1, 8, 3>}, {pipeline_mode = #tpu.pipeline_mode<synchronous>, transform_indices = @transform_2, window_bounds = array<i64: 8, 1>}, {transform_indices = @transform_3, window_bounds = array<i64: 1, 8, 64>}]} {
    %c0 = arith.constant 0 : index
    %c0_0 = arith.constant 0 : index
    %c0_1 = arith.constant 0 : index
    %0 = vector.load %arg3[%c0, %c0_0, %c0_1] : memref<1x8x3xf32, #tpu.memory_space<vmem>>, vector<1x8x3xf32>
    %1 = vector.shape_cast %0 : vector<1x8x3xf32> to vector<8x3xf32>
    %c0_2 = arith.constant 0 : index
    %c0_3 = arith.constant 0 : index
    %c0_4 = arith.constant 0 : index
    %c0_5 = arith.constant 0 : index
    %2 = vector.load %arg2[%c0_2, %c0_3, %c0_4, %c0_5] : memref<1x1x3x64xf32, #tpu.memory_space<vmem>>, vector<1x1x3x64xf32>
    %3 = vector.shape_cast %2 : vector<1x1x3x64xf32> to vector<3x64xf32>
    %cst = arith.constant dense<0.000000e+00> : vector<8x64xf32>
    %4 = tpu.matmul %1, %3, %cst {dimension_numbers = #tpu.dot_dimension_numbers<[1], [0], [0], [1], [0, 0, 1, 1], [], []>} : vector<8x3xf32>, vector<3x64xf32>, vector<8x64xf32> -> vector<8x64xf32>
    %c0_i32 = arith.constant 0 : i32
    %5 = arith.cmpi eq, %arg1, %c0_i32 : i32
    %6 = arith.extui %5 : i1 to i32
    %c0_i32_6 = arith.constant 0 : i32
    %7 = arith.cmpi ne, %6, %c0_i32_6 : i32
    scf.if %7 {
      %c0_10 = arith.constant 0 : index
      %c0_11 = arith.constant 0 : index
      %c0_12 = arith.constant 0 : index
      %14 = vector.load %arg5[%c0_10, %c0_11, %c0_12] : memref<1x8x64xf32, #tpu.memory_space<vmem>>, vector<1x8x64xf32>
      %15 = vector.shape_cast %14 : vector<1x8x64xf32> to vector<8x64xf32>
      %16 = vector.shape_cast %4 : vector<8x64xf32> to vector<1x8x64xf32>
      tpu.vector_store %arg5[%c0_10, %c0_11, %c0_12], %16 {strides = array<i32>} : memref<1x8x64xf32, #tpu.memory_space<vmem>>, vector<1x8x64xf32>,
    } else {
    }
    %c0_i32_7 = arith.constant 0 : i32
    %8 = arith.cmpi sgt, %arg1, %c0_i32_7 : i32
    %9 = arith.extui %8 : i1 to i32
    %c0_i32_8 = arith.constant 0 : i32
    %10 = arith.cmpi ne, %9, %c0_i32_8 : i32
    scf.if %10 {
      %c0_10 = arith.constant 0 : index
      %c0_11 = arith.constant 0 : index
      %c0_12 = arith.constant 0 : index
      %14 = vector.load %arg5[%c0_10, %c0_11, %c0_12] : memref<1x8x64xf32, #tpu.memory_space<vmem>>, vector<1x8x64xf32>
      %15 = vector.shape_cast %14 : vector<1x8x64xf32> to vector<8x64xf32>
      %16 = arith.addf %15, %4 : vector<8x64xf32>
      %c0_13 = arith.constant 0 : index
      %c0_14 = arith.constant 0 : index
      %c0_15 = arith.constant 0 : index
      %17 = vector.load %arg5[%c0_13, %c0_14, %c0_15] : memref<1x8x64xf32, #tpu.memory_space<vmem>>, vector<1x8x64xf32>
      %18 = vector.shape_cast %17 : vector<1x8x64xf32> to vector<8x64xf32>
      %19 = vector.shape_cast %16 : vector<8x64xf32> to vector<1x8x64xf32>
      tpu.vector_store %arg5[%c0_13, %c0_14, %c0_15], %19 {strides = array<i32>} : memref<1x8x64xf32, #tpu.memory_space<vmem>>, vector<1x8x64xf32>,
    } else {
    }
    %c15_i32 = arith.constant 15 : i32
    %11 = arith.cmpi eq, %arg1, %c15_i32 : i32
    %12 = arith.extui %11 : i1 to i32
    %c0_i32_9 = arith.constant 0 : i32
    %13 = arith.cmpi ne, %12, %c0_i32_9 : i32
    scf.if %13 {
      %c0_10 = arith.constant 0 : index
      %c0_11 = arith.constant 0 : index
      %c0_12 = arith.constant 0 : index
      %14 = vector.load %arg5[%c0_10, %c0_11, %c0_12] : memref<1x8x64xf32, #tpu.memory_space<vmem>>, vector<1x8x64xf32>
      %15 = vector.shape_cast %14 : vector<1x8x64xf32> to vector<8x64xf32>
      %cst_13 = arith.constant 0.000000e+00 : f32
      %16 = vector.broadcast %cst_13 : f32 to vector<8x64xf32>
      %17 = arith.cmpf oge, %15, %16 : vector<8x64xf32>
      %cst_14 = arith.constant 2.000000e-01 : f32
      %18 = vector.broadcast %cst_14 : f32 to vector<8x64xf32>
      %19 = arith.mulf %18, %15 : vector<8x64xf32>
      %20 = arith.select %17, %15, %19 : vector<8x64xi1>, vector<8x64xf32>
      %c0_15 = arith.constant 0 : index
      %c0_16 = arith.constant 0 : index
      %c0_17 = arith.constant 0 : index
      %21 = vector.load %arg5[%c0_15, %c0_16, %c0_17] : memref<1x8x64xf32, #tpu.memory_space<vmem>>, vector<1x8x64xf32>
      %22 = vector.shape_cast %21 : vector<1x8x64xf32> to vector<8x64xf32>
      %23 = vector.shape_cast %20 : vector<8x64xf32> to vector<1x8x64xf32>
      tpu.vector_store %arg5[%c0_15, %c0_16, %c0_17], %23 {strides = array<i32>} : memref<1x8x64xf32, #tpu.memory_space<vmem>>, vector<1x8x64xf32>,
    } else {
    }
    return
  }
  func.func @transform_0(%arg0: i32, %arg1: i32) -> (i32, i32, i32, i32) {
    %c0_i32 = arith.constant 0 : i32
    %c0_i32_0 = arith.constant 0 : i32
    %c0_i32_1 = arith.constant 0 : i32
    return %arg1, %arg0, %c0_i32, %c0_i32_0 : i32, i32, i32, i32
  }
  func.func @transform_1(%arg0: i32, %arg1: i32) -> (i32, i32, i32) {
    %c0_i32 = arith.constant 0 : i32
    %c0_i32_0 = arith.constant 0 : i32
    %c0_i32_1 = arith.constant 0 : i32
    return %arg1, %c0_i32, %c0_i32_0 : i32, i32, i32
  }
  func.func @transform_2(%arg0: i32, %arg1: i32) -> (i32, i32) {
    %c0_i32 = arith.constant 0 : i32
    %c0_i32_0 = arith.constant 0 : i32
    %c0_i32_1 = arith.constant 0 : i32
    return %c0_i32, %c0_i32_0 : i32, i32
  }
  func.func @transform_3(%arg0: i32, %arg1: i32) -> (i32, i32, i32) {
    %c0_i32 = arith.constant 0 : i32
    %c0_i32_0 = arith.constant 0 : i32
    %c0_i32_1 = arith.constant 0 : i32
    return %arg0, %c0_i32, %c0_i32_0 : i32, i32, i32
  }
}

module attributes {stable_mosaic.version = 11 : i64} {
  func.func @_conv_block_kernel(%arg0: i32, %arg1: i32, %arg2: memref<1x1x8x16xf32, #tpu.memory_space<vmem>>, %arg3: memref<1x16x8xf32, #tpu.memory_space<vmem>>, %arg4: memref<16x1xf32, #tpu.memory_space<vmem>>, %arg5: memref<1x16x16xf32, #tpu.memory_space<vmem>>) attributes {dimension_semantics = [#tpu.dimension_semantics<parallel>, #tpu.dimension_semantics<arbitrary>], iteration_bounds = array<i64: 2, 16>, scalar_prefetch = 0 : i64, scratch_operands = 0 : i64, tpu.core_type = #tpu.core_type<tc>, window_params = [{transform_indices = @transform_0, window_bounds = array<i64: 1, 1, 8, 16>}, {transform_indices = @transform_1, window_bounds = array<i64: 1, 16, 8>}, {pipeline_mode = #tpu.pipeline_mode<synchronous>, transform_indices = @transform_2, window_bounds = array<i64: 16, 1>}, {transform_indices = @transform_3, window_bounds = array<i64: 1, 16, 16>}]} {
    %c0 = arith.constant 0 : index
    %c0_0 = arith.constant 0 : index
    %c0_1 = arith.constant 0 : index
    %0 = vector.load %arg3[%c0, %c0_0, %c0_1] : memref<1x16x8xf32, #tpu.memory_space<vmem>>, vector<1x16x8xf32>
    %1 = vector.shape_cast %0 : vector<1x16x8xf32> to vector<16x8xf32>
    %c0_2 = arith.constant 0 : index
    %c0_3 = arith.constant 0 : index
    %c0_4 = arith.constant 0 : index
    %c0_5 = arith.constant 0 : index
    %2 = vector.load %arg2[%c0_2, %c0_3, %c0_4, %c0_5] : memref<1x1x8x16xf32, #tpu.memory_space<vmem>>, vector<1x1x8x16xf32>
    %3 = vector.shape_cast %2 : vector<1x1x8x16xf32> to vector<8x16xf32>
    %cst = arith.constant dense<0.000000e+00> : vector<16x16xf32>
    %4 = tpu.matmul %1, %3, %cst {dimension_numbers = #tpu.dot_dimension_numbers<[1], [0], [0], [1], [0, 0, 1, 1], [], []>} : vector<16x8xf32>, vector<8x16xf32>, vector<16x16xf32> -> vector<16x16xf32>
    %c0_i32 = arith.constant 0 : i32
    %5 = arith.cmpi eq, %arg1, %c0_i32 : i32
    %6 = arith.extui %5 : i1 to i32
    %c0_i32_6 = arith.constant 0 : i32
    %7 = arith.cmpi ne, %6, %c0_i32_6 : i32
    scf.if %7 {
      %c0_10 = arith.constant 0 : index
      %c0_11 = arith.constant 0 : index
      %c0_12 = arith.constant 0 : index
      %14 = vector.load %arg5[%c0_10, %c0_11, %c0_12] : memref<1x16x16xf32, #tpu.memory_space<vmem>>, vector<1x16x16xf32>
      %15 = vector.shape_cast %14 : vector<1x16x16xf32> to vector<16x16xf32>
      %16 = vector.shape_cast %4 : vector<16x16xf32> to vector<1x16x16xf32>
      tpu.vector_store %arg5[%c0_10, %c0_11, %c0_12], %16 {strides = array<i32>} : memref<1x16x16xf32, #tpu.memory_space<vmem>>, vector<1x16x16xf32>,
    } else {
    }
    %c0_i32_7 = arith.constant 0 : i32
    %8 = arith.cmpi sgt, %arg1, %c0_i32_7 : i32
    %9 = arith.extui %8 : i1 to i32
    %c0_i32_8 = arith.constant 0 : i32
    %10 = arith.cmpi ne, %9, %c0_i32_8 : i32
    scf.if %10 {
      %c0_10 = arith.constant 0 : index
      %c0_11 = arith.constant 0 : index
      %c0_12 = arith.constant 0 : index
      %14 = vector.load %arg5[%c0_10, %c0_11, %c0_12] : memref<1x16x16xf32, #tpu.memory_space<vmem>>, vector<1x16x16xf32>
      %15 = vector.shape_cast %14 : vector<1x16x16xf32> to vector<16x16xf32>
      %16 = arith.addf %15, %4 : vector<16x16xf32>
      %c0_13 = arith.constant 0 : index
      %c0_14 = arith.constant 0 : index
      %c0_15 = arith.constant 0 : index
      %17 = vector.load %arg5[%c0_13, %c0_14, %c0_15] : memref<1x16x16xf32, #tpu.memory_space<vmem>>, vector<1x16x16xf32>
      %18 = vector.shape_cast %17 : vector<1x16x16xf32> to vector<16x16xf32>
      %19 = vector.shape_cast %16 : vector<16x16xf32> to vector<1x16x16xf32>
      tpu.vector_store %arg5[%c0_13, %c0_14, %c0_15], %19 {strides = array<i32>} : memref<1x16x16xf32, #tpu.memory_space<vmem>>, vector<1x16x16xf32>,
    } else {
    }
    %c15_i32 = arith.constant 15 : i32
    %11 = arith.cmpi eq, %arg1, %c15_i32 : i32
    %12 = arith.extui %11 : i1 to i32
    %c0_i32_9 = arith.constant 0 : i32
    %13 = arith.cmpi ne, %12, %c0_i32_9 : i32
    scf.if %13 {
      %c0_10 = arith.constant 0 : index
      %c0_11 = arith.constant 0 : index
      %c0_12 = arith.constant 0 : index
      %14 = vector.load %arg5[%c0_10, %c0_11, %c0_12] : memref<1x16x16xf32, #tpu.memory_space<vmem>>, vector<1x16x16xf32>
      %15 = vector.shape_cast %14 : vector<1x16x16xf32> to vector<16x16xf32>
      %cst_13 = arith.constant dense<0.000000e+00> : vector<16xf32>
      %16 = vector.multi_reduction <add>, %15, %cst_13 [1] : vector<16x16xf32> to vector<16xf32>
      %17 = vector.shape_cast %16 : vector<16xf32> to vector<16x1xf32>
      %cst_14 = arith.constant 1.600000e+01 : f32
      %18 = vector.broadcast %cst_14 : f32 to vector<16x1xf32>
      %19 = arith.divf %17, %18 : vector<16x1xf32>
      %20 = vector.broadcast %19 : vector<16x1xf32> to vector<16x16xf32>
      %21 = arith.subf %15, %20 : vector<16x16xf32>
      %22 = arith.mulf %21, %21 : vector<16x16xf32>
      %cst_15 = arith.constant dense<0.000000e+00> : vector<16xf32>
      %23 = vector.multi_reduction <add>, %22, %cst_15 [1] : vector<16x16xf32> to vector<16xf32>
      %24 = vector.shape_cast %23 : vector<16xf32> to vector<16x1xf32>
      %cst_16 = arith.constant 1.600000e+01 : f32
      %25 = vector.broadcast %cst_16 : f32 to vector<16x1xf32>
      %26 = arith.divf %24, %25 : vector<16x1xf32>
      %cst_17 = arith.constant 9.99999974E-6 : f32
      %27 = vector.broadcast %cst_17 : f32 to vector<16x1xf32>
      %28 = arith.addf %26, %27 : vector<16x1xf32>
      %29 = math.rsqrt %28 : vector<16x1xf32>
      %30 = vector.broadcast %29 : vector<16x1xf32> to vector<16x16xf32>
      %31 = arith.mulf %21, %30 : vector<16x16xf32>
      %cst_18 = arith.constant 0.000000e+00 : f32
      %32 = vector.broadcast %cst_18 : f32 to vector<16x16xf32>
      %33 = arith.cmpf oge, %31, %32 : vector<16x16xf32>
      %cst_19 = arith.constant 2.000000e-01 : f32
      %34 = vector.broadcast %cst_19 : f32 to vector<16x16xf32>
      %35 = arith.mulf %34, %31 : vector<16x16xf32>
      %36 = arith.select %33, %31, %35 : vector<16x16xi1>, vector<16x16xf32>
      %c0_20 = arith.constant 0 : index
      %c0_21 = arith.constant 0 : index
      %c0_22 = arith.constant 0 : index
      %37 = vector.load %arg5[%c0_20, %c0_21, %c0_22] : memref<1x16x16xf32, #tpu.memory_space<vmem>>, vector<1x16x16xf32>
      %38 = vector.shape_cast %37 : vector<1x16x16xf32> to vector<16x16xf32>
      %39 = vector.shape_cast %36 : vector<16x16xf32> to vector<1x16x16xf32>
      tpu.vector_store %arg5[%c0_20, %c0_21, %c0_22], %39 {strides = array<i32>} : memref<1x16x16xf32, #tpu.memory_space<vmem>>, vector<1x16x16xf32>,
    } else {
    }
    return
  }
  func.func @transform_0(%arg0: i32, %arg1: i32) -> (i32, i32, i32, i32) {
    %c0_i32 = arith.constant 0 : i32
    %c0_i32_0 = arith.constant 0 : i32
    %c0_i32_1 = arith.constant 0 : i32
    return %arg1, %arg0, %c0_i32, %c0_i32_0 : i32, i32, i32, i32
  }
  func.func @transform_1(%arg0: i32, %arg1: i32) -> (i32, i32, i32) {
    %c0_i32 = arith.constant 0 : i32
    %c0_i32_0 = arith.constant 0 : i32
    %c0_i32_1 = arith.constant 0 : i32
    return %arg1, %c0_i32, %c0_i32_0 : i32, i32, i32
  }
  func.func @transform_2(%arg0: i32, %arg1: i32) -> (i32, i32) {
    %c0_i32 = arith.constant 0 : i32
    %c0_i32_0 = arith.constant 0 : i32
    %c0_i32_1 = arith.constant 0 : i32
    return %c0_i32, %c0_i32_0 : i32, i32
  }
  func.func @transform_3(%arg0: i32, %arg1: i32) -> (i32, i32, i32) {
    %c0_i32 = arith.constant 0 : i32
    %c0_i32_0 = arith.constant 0 : i32
    %c0_i32_1 = arith.constant 0 : i32
    return %arg0, %c0_i32, %c0_i32_0 : i32, i32, i32
  }
}

module attributes {stable_mosaic.version = 11 : i64} {
  func.func @_conv_block_kernel(%arg0: i32, %arg1: i32, %arg2: memref<1x1x16x4xf32, #tpu.memory_space<vmem>>, %arg3: memref<1x32x16xf32, #tpu.memory_space<vmem>>, %arg4: memref<32x1xf32, #tpu.memory_space<vmem>>, %arg5: memref<1x32x4xf32, #tpu.memory_space<vmem>>) attributes {dimension_semantics = [#tpu.dimension_semantics<parallel>, #tpu.dimension_semantics<arbitrary>], iteration_bounds = array<i64: 2, 16>, scalar_prefetch = 0 : i64, scratch_operands = 0 : i64, tpu.core_type = #tpu.core_type<tc>, window_params = [{transform_indices = @transform_0, window_bounds = array<i64: 1, 1, 16, 4>}, {transform_indices = @transform_1, window_bounds = array<i64: 1, 32, 16>}, {pipeline_mode = #tpu.pipeline_mode<synchronous>, transform_indices = @transform_2, window_bounds = array<i64: 32, 1>}, {transform_indices = @transform_3, window_bounds = array<i64: 1, 32, 4>}]} {
    %c0 = arith.constant 0 : index
    %c0_0 = arith.constant 0 : index
    %c0_1 = arith.constant 0 : index
    %0 = vector.load %arg3[%c0, %c0_0, %c0_1] : memref<1x32x16xf32, #tpu.memory_space<vmem>>, vector<1x32x16xf32>
    %1 = vector.shape_cast %0 : vector<1x32x16xf32> to vector<32x16xf32>
    %c0_2 = arith.constant 0 : index
    %c0_3 = arith.constant 0 : index
    %c0_4 = arith.constant 0 : index
    %c0_5 = arith.constant 0 : index
    %2 = vector.load %arg2[%c0_2, %c0_3, %c0_4, %c0_5] : memref<1x1x16x4xf32, #tpu.memory_space<vmem>>, vector<1x1x16x4xf32>
    %3 = vector.shape_cast %2 : vector<1x1x16x4xf32> to vector<16x4xf32>
    %cst = arith.constant dense<0.000000e+00> : vector<32x4xf32>
    %4 = tpu.matmul %1, %3, %cst {dimension_numbers = #tpu.dot_dimension_numbers<[1], [0], [0], [1], [0, 0, 1, 1], [], []>} : vector<32x16xf32>, vector<16x4xf32>, vector<32x4xf32> -> vector<32x4xf32>
    %c0_i32 = arith.constant 0 : i32
    %5 = arith.cmpi eq, %arg1, %c0_i32 : i32
    %6 = arith.extui %5 : i1 to i32
    %c0_i32_6 = arith.constant 0 : i32
    %7 = arith.cmpi ne, %6, %c0_i32_6 : i32
    scf.if %7 {
      %c0_10 = arith.constant 0 : index
      %c0_11 = arith.constant 0 : index
      %c0_12 = arith.constant 0 : index
      %14 = vector.load %arg5[%c0_10, %c0_11, %c0_12] : memref<1x32x4xf32, #tpu.memory_space<vmem>>, vector<1x32x4xf32>
      %15 = vector.shape_cast %14 : vector<1x32x4xf32> to vector<32x4xf32>
      %16 = vector.shape_cast %4 : vector<32x4xf32> to vector<1x32x4xf32>
      tpu.vector_store %arg5[%c0_10, %c0_11, %c0_12], %16 {strides = array<i32>} : memref<1x32x4xf32, #tpu.memory_space<vmem>>, vector<1x32x4xf32>,
    } else {
    }
    %c0_i32_7 = arith.constant 0 : i32
    %8 = arith.cmpi sgt, %arg1, %c0_i32_7 : i32
    %9 = arith.extui %8 : i1 to i32
    %c0_i32_8 = arith.constant 0 : i32
    %10 = arith.cmpi ne, %9, %c0_i32_8 : i32
    scf.if %10 {
      %c0_10 = arith.constant 0 : index
      %c0_11 = arith.constant 0 : index
      %c0_12 = arith.constant 0 : index
      %14 = vector.load %arg5[%c0_10, %c0_11, %c0_12] : memref<1x32x4xf32, #tpu.memory_space<vmem>>, vector<1x32x4xf32>
      %15 = vector.shape_cast %14 : vector<1x32x4xf32> to vector<32x4xf32>
      %16 = arith.addf %15, %4 : vector<32x4xf32>
      %c0_13 = arith.constant 0 : index
      %c0_14 = arith.constant 0 : index
      %c0_15 = arith.constant 0 : index
      %17 = vector.load %arg5[%c0_13, %c0_14, %c0_15] : memref<1x32x4xf32, #tpu.memory_space<vmem>>, vector<1x32x4xf32>
      %18 = vector.shape_cast %17 : vector<1x32x4xf32> to vector<32x4xf32>
      %19 = vector.shape_cast %16 : vector<32x4xf32> to vector<1x32x4xf32>
      tpu.vector_store %arg5[%c0_13, %c0_14, %c0_15], %19 {strides = array<i32>} : memref<1x32x4xf32, #tpu.memory_space<vmem>>, vector<1x32x4xf32>,
    } else {
    }
    %c15_i32 = arith.constant 15 : i32
    %11 = arith.cmpi eq, %arg1, %c15_i32 : i32
    %12 = arith.extui %11 : i1 to i32
    %c0_i32_9 = arith.constant 0 : i32
    %13 = arith.cmpi ne, %12, %c0_i32_9 : i32
    scf.if %13 {
      %c0_10 = arith.constant 0 : index
      %c0_11 = arith.constant 0 : index
      %c0_12 = arith.constant 0 : index
      %14 = vector.load %arg5[%c0_10, %c0_11, %c0_12] : memref<1x32x4xf32, #tpu.memory_space<vmem>>, vector<1x32x4xf32>
      %15 = vector.shape_cast %14 : vector<1x32x4xf32> to vector<32x4xf32>
      %cst_13 = arith.constant dense<0.000000e+00> : vector<32xf32>
      %16 = vector.multi_reduction <add>, %15, %cst_13 [1] : vector<32x4xf32> to vector<32xf32>
      %17 = vector.shape_cast %16 : vector<32xf32> to vector<32x1xf32>
      %cst_14 = arith.constant 4.000000e+00 : f32
      %18 = vector.broadcast %cst_14 : f32 to vector<32x1xf32>
      %19 = arith.divf %17, %18 : vector<32x1xf32>
      %20 = vector.broadcast %19 : vector<32x1xf32> to vector<32x4xf32>
      %21 = arith.subf %15, %20 : vector<32x4xf32>
      %22 = arith.mulf %21, %21 : vector<32x4xf32>
      %cst_15 = arith.constant dense<0.000000e+00> : vector<32xf32>
      %23 = vector.multi_reduction <add>, %22, %cst_15 [1] : vector<32x4xf32> to vector<32xf32>
      %24 = vector.shape_cast %23 : vector<32xf32> to vector<32x1xf32>
      %cst_16 = arith.constant 4.000000e+00 : f32
      %25 = vector.broadcast %cst_16 : f32 to vector<32x1xf32>
      %26 = arith.divf %24, %25 : vector<32x1xf32>
      %cst_17 = arith.constant 9.99999974E-6 : f32
      %27 = vector.broadcast %cst_17 : f32 to vector<32x1xf32>
      %28 = arith.addf %26, %27 : vector<32x1xf32>
      %29 = math.rsqrt %28 : vector<32x1xf32>
      %30 = vector.broadcast %29 : vector<32x1xf32> to vector<32x4xf32>
      %31 = arith.mulf %21, %30 : vector<32x4xf32>
      %cst_18 = arith.constant 0.000000e+00 : f32
      %32 = vector.broadcast %cst_18 : f32 to vector<32x4xf32>
      %33 = arith.cmpf oge, %31, %32 : vector<32x4xf32>
      %cst_19 = arith.constant 2.000000e-01 : f32
      %34 = vector.broadcast %cst_19 : f32 to vector<32x4xf32>
      %35 = arith.mulf %34, %31 : vector<32x4xf32>
      %36 = arith.select %33, %31, %35 : vector<32x4xi1>, vector<32x4xf32>
      %c0_20 = arith.constant 0 : index
      %c0_21 = arith.constant 0 : index
      %c0_22 = arith.constant 0 : index
      %37 = vector.load %arg5[%c0_20, %c0_21, %c0_22] : memref<1x32x4xf32, #tpu.memory_space<vmem>>, vector<1x32x4xf32>
      %38 = vector.shape_cast %37 : vector<1x32x4xf32> to vector<32x4xf32>
      %39 = vector.shape_cast %36 : vector<32x4xf32> to vector<1x32x4xf32>
      tpu.vector_store %arg5[%c0_20, %c0_21, %c0_22], %39 {strides = array<i32>} : memref<1x32x4xf32, #tpu.memory_space<vmem>>, vector<1x32x4xf32>,
    } else {
    }
    return
  }
  func.func @transform_0(%arg0: i32, %arg1: i32) -> (i32, i32, i32, i32) {
    %c0_i32 = arith.constant 0 : i32
    %c0_i32_0 = arith.constant 0 : i32
    %c0_i32_1 = arith.constant 0 : i32
    return %arg1, %arg0, %c0_i32, %c0_i32_0 : i32, i32, i32, i32
  }
  func.func @transform_1(%arg0: i32, %arg1: i32) -> (i32, i32, i32) {
    %c0_i32 = arith.constant 0 : i32
    %c0_i32_0 = arith.constant 0 : i32
    %c0_i32_1 = arith.constant 0 : i32
    return %arg1, %c0_i32, %c0_i32_0 : i32, i32, i32
  }
  func.func @transform_2(%arg0: i32, %arg1: i32) -> (i32, i32) {
    %c0_i32 = arith.constant 0 : i32
    %c0_i32_0 = arith.constant 0 : i32
    %c0_i32_1 = arith.constant 0 : i32
    return %c0_i32, %c0_i32_0 : i32, i32
  }
  func.func @transform_3(%arg0: i32, %arg1: i32) -> (i32, i32, i32) {
    %c0_i32 = arith.constant 0 : i32
    %c0_i32_0 = arith.constant 0 : i32
    %c0_i32_1 = arith.constant 0 : i32
    return %arg0, %c0_i32, %c0_i32_0 : i32, i32, i32
  }
}

module attributes {stable_mosaic.version = 11 : i64} {
  func.func @_conv_block_kernel(%arg0: i32, %arg1: i32, %arg2: memref<1x1x32x1xf32, #tpu.memory_space<vmem>>, %arg3: memref<1x1x32xf32, #tpu.memory_space<vmem>>, %arg4: memref<1x1xf32, #tpu.memory_space<vmem>>, %arg5: memref<1x1x1xf32, #tpu.memory_space<vmem>>) attributes {dimension_semantics = [#tpu.dimension_semantics<parallel>, #tpu.dimension_semantics<arbitrary>], iteration_bounds = array<i64: 2, 16>, scalar_prefetch = 0 : i64, scratch_operands = 0 : i64, tpu.core_type = #tpu.core_type<tc>, window_params = [{transform_indices = @transform_0, window_bounds = array<i64: 1, 1, 32, 1>}, {transform_indices = @transform_1, window_bounds = array<i64: 1, 1, 32>}, {pipeline_mode = #tpu.pipeline_mode<synchronous>, transform_indices = @transform_2, window_bounds = array<i64: 1, 1>}, {transform_indices = @transform_3, window_bounds = array<i64: 1, 1, 1>}]} {
    %c0 = arith.constant 0 : index
    %c0_0 = arith.constant 0 : index
    %c0_1 = arith.constant 0 : index
    %0 = vector.load %arg3[%c0, %c0_0, %c0_1] : memref<1x1x32xf32, #tpu.memory_space<vmem>>, vector<1x1x32xf32>
    %1 = vector.shape_cast %0 : vector<1x1x32xf32> to vector<1x32xf32>
    %c0_2 = arith.constant 0 : index
    %c0_3 = arith.constant 0 : index
    %c0_4 = arith.constant 0 : index
    %c0_5 = arith.constant 0 : index
    %2 = vector.load %arg2[%c0_2, %c0_3, %c0_4, %c0_5] : memref<1x1x32x1xf32, #tpu.memory_space<vmem>>, vector<1x1x32x1xf32>
    %3 = vector.shape_cast %2 : vector<1x1x32x1xf32> to vector<32x1xf32>
    %cst = arith.constant dense<0.000000e+00> : vector<1x1xf32>
    %4 = tpu.matmul %1, %3, %cst {dimension_numbers = #tpu.dot_dimension_numbers<[1], [0], [0], [1], [0, 0, 1, 1], [], []>} : vector<1x32xf32>, vector<32x1xf32>, vector<1x1xf32> -> vector<1x1xf32>
    %c0_i32 = arith.constant 0 : i32
    %5 = arith.cmpi eq, %arg1, %c0_i32 : i32
    %6 = arith.extui %5 : i1 to i32
    %c0_i32_6 = arith.constant 0 : i32
    %7 = arith.cmpi ne, %6, %c0_i32_6 : i32
    scf.if %7 {
      %c0_10 = arith.constant 0 : index
      %c0_11 = arith.constant 0 : index
      %c0_12 = arith.constant 0 : index
      %14 = vector.load %arg5[%c0_10, %c0_11, %c0_12] : memref<1x1x1xf32, #tpu.memory_space<vmem>>, vector<1x1x1xf32>
      %15 = vector.shape_cast %14 : vector<1x1x1xf32> to vector<1x1xf32>
      %16 = vector.shape_cast %4 : vector<1x1xf32> to vector<1x1x1xf32>
      tpu.vector_store %arg5[%c0_10, %c0_11, %c0_12], %16 {strides = array<i32>} : memref<1x1x1xf32, #tpu.memory_space<vmem>>, vector<1x1x1xf32>,
    } else {
    }
    %c0_i32_7 = arith.constant 0 : i32
    %8 = arith.cmpi sgt, %arg1, %c0_i32_7 : i32
    %9 = arith.extui %8 : i1 to i32
    %c0_i32_8 = arith.constant 0 : i32
    %10 = arith.cmpi ne, %9, %c0_i32_8 : i32
    scf.if %10 {
      %c0_10 = arith.constant 0 : index
      %c0_11 = arith.constant 0 : index
      %c0_12 = arith.constant 0 : index
      %14 = vector.load %arg5[%c0_10, %c0_11, %c0_12] : memref<1x1x1xf32, #tpu.memory_space<vmem>>, vector<1x1x1xf32>
      %15 = vector.shape_cast %14 : vector<1x1x1xf32> to vector<1x1xf32>
      %16 = arith.addf %15, %4 : vector<1x1xf32>
      %c0_13 = arith.constant 0 : index
      %c0_14 = arith.constant 0 : index
      %c0_15 = arith.constant 0 : index
      %17 = vector.load %arg5[%c0_13, %c0_14, %c0_15] : memref<1x1x1xf32, #tpu.memory_space<vmem>>, vector<1x1x1xf32>
      %18 = vector.shape_cast %17 : vector<1x1x1xf32> to vector<1x1xf32>
      %19 = vector.shape_cast %16 : vector<1x1xf32> to vector<1x1x1xf32>
      tpu.vector_store %arg5[%c0_13, %c0_14, %c0_15], %19 {strides = array<i32>} : memref<1x1x1xf32, #tpu.memory_space<vmem>>, vector<1x1x1xf32>,
    } else {
    }
    %c15_i32 = arith.constant 15 : i32
    %11 = arith.cmpi eq, %arg1, %c15_i32 : i32
    %12 = arith.extui %11 : i1 to i32
    %c0_i32_9 = arith.constant 0 : i32
    %13 = arith.cmpi ne, %12, %c0_i32_9 : i32
    scf.if %13 {
      %c0_10 = arith.constant 0 : index
      %c0_11 = arith.constant 0 : index
      %c0_12 = arith.constant 0 : index
      %14 = vector.load %arg5[%c0_10, %c0_11, %c0_12] : memref<1x1x1xf32, #tpu.memory_space<vmem>>, vector<1x1x1xf32>
      %15 = vector.shape_cast %14 : vector<1x1x1xf32> to vector<1x1xf32>
      %c0_13 = arith.constant 0 : index
      %c0_14 = arith.constant 0 : index
      %16 = vector.load %arg4[%c0_13, %c0_14] : memref<1x1xf32, #tpu.memory_space<vmem>>, vector<1x1xf32>
      %17 = arith.addf %15, %16 : vector<1x1xf32>
      %c0_15 = arith.constant 0 : index
      %c0_16 = arith.constant 0 : index
      %c0_17 = arith.constant 0 : index
      %18 = vector.load %arg5[%c0_15, %c0_16, %c0_17] : memref<1x1x1xf32, #tpu.memory_space<vmem>>, vector<1x1x1xf32>
      %19 = vector.shape_cast %18 : vector<1x1x1xf32> to vector<1x1xf32>
      %20 = vector.shape_cast %17 : vector<1x1xf32> to vector<1x1x1xf32>
      tpu.vector_store %arg5[%c0_15, %c0_16, %c0_17], %20 {strides = array<i32>} : memref<1x1x1xf32, #tpu.memory_space<vmem>>, vector<1x1x1xf32>,
    } else {
    }
    return
  }
  func.func @transform_0(%arg0: i32, %arg1: i32) -> (i32, i32, i32, i32) {
    %c0_i32 = arith.constant 0 : i32
    %c0_i32_0 = arith.constant 0 : i32
    %c0_i32_1 = arith.constant 0 : i32
    return %arg1, %arg0, %c0_i32, %c0_i32_0 : i32, i32, i32, i32
  }
  func.func @transform_1(%arg0: i32, %arg1: i32) -> (i32, i32, i32) {
    %c0_i32 = arith.constant 0 : i32
    %c0_i32_0 = arith.constant 0 : i32
    %c0_i32_1 = arith.constant 0 : i32
    return %arg1, %c0_i32, %c0_i32_0 : i32, i32, i32
  }
  func.func @transform_2(%arg0: i32, %arg1: i32) -> (i32, i32) {
    %c0_i32 = arith.constant 0 : i32
    %c0_i32_0 = arith.constant 0 : i32
    %c0_i32_1 = arith.constant 0 : i32
    return %c0_i32, %c0_i32_0 : i32, i32
  }
  func.func @transform_3(%arg0: i32, %arg1: i32) -> (i32, i32, i32) {
    %c0_i32 = arith.constant 0 : i32
    %c0_i32_0 = arith.constant 0 : i32
    %c0_i32_1 = arith.constant 0 : i32
    return %arg0, %c0_i32, %c0_i32_0 : i32, i32, i32
  }
}

</mosaic_0001>

<bundles_post_ra>
// kernel: d_net_forward.4
= control target key start
LH: loop header
LB: loop body
LE: loop exit
PB: predicated region body
PF: predicated region fallthrough
CT: control target
= control target key end

     0   :  { %s522_s12 = smov 0   ;;  %s524_s13 = smov 0   ;;  %s583_s0 = inlined_call_operand.vmem [shape: f32[16,2,3,64], index: 0, kind: input, shape index: {}]   ;;  %s584_s1 = inlined_call_operand.vmem [shape: f32[16,8,3], index: 1, kind: input, shape index: {}]   ;;  %s585_s2 = inlined_call_operand.vmem [shape: f32[8,1], index: 2, kind: input, shape index: {}]   ;;  %s586_s3 = inlined_call_operand.vmem [shape: f32[2,8,64], index: 3, kind: output, shape index: {}]  }
   0x1   :  { %s526_s14 = smov 0   ;;  %s528_s15 = smov 0  }
   0x2   :  { %s530_s16 = smov 0  }
   0x3 LB: > { %s22_s2 = sadd.s32 1, %s490_s14  ;;  %s25_s17 = sadd.s32 1, %s494_s15  ;;  %s498_s16 = sphi %s530_s16, %s13_s16   ;;  %s494_s15 = sphi %s528_s15, %s590_s15   ;;  %s490_s14 = sphi %s526_s14, %s589_s14   ;;  %s486_s13 = sphi %s524_s13, %s588_s13   ;;  %s482_s12 = sphi %s522_s12, %s587_s12  }
   0x4   : > { %p23_p0 = scmp.ge.s32.totalorder %s22_s2, 16  ;;  %p399_p1 = scmp.ge.s32.totalorder %s498_s16, 1 }
   0x5   : > { %p163_p2 = scmp.lt.s32.totalorder %s498_s16, 33 }
   0x6   : > { %s592_s2 = smov (%p23_p0, %s22_s2), 0  ;;  %s594_s17 = smov (!%p23_p0, %s25_s17), %s494_s15 }
   0x7   : > { %p164_p3 = pnand %p399_p1, %p163_p2  ;;  %p27_p4 = scmp.ge.s32.totalorder %s594_s17, 2 }
   0x8   : > { %p193_p5 = scmp.lt.s32.totalorder (!%p164_p3), %s482_s12, 15  ;;  %p195_p6 = scmp.lt.s32.totalorder (!%p164_p3), %s486_s13, 1  ;;  %v500_v0 = vmov (!%p164_p3), 0.0   ;;  %vm501_vm0 = vmmov (!%p164_p3), 0   ;;  %vm215_vm1 = vcmask (!%p164_p3), 1042432   ;;  %vm211_vm2 = vcmask (!%p164_p3), 23552  }
   0x9   : > { %s596_s17 = smov (%p27_p4, %s594_s17), 0  ;;  %167 = sbr.rel (%p164_p3) target bundleno = 258 (0x102), region = 32 }
   0xa   : > { %413 = vmatprep.subr.mxu0 (!%p164_p3), %v500_v0  ;;  %415 = vmatprep.mubr.msk.f32.mxu0 (!%p164_p3), %vm501_vm0, %v500_v0  ;;  %p406_p7 = scmp.ne.s32.totalorder (!%p164_p3), %s482_s12, 0 }
  0x10   : > { %s194_s18 = scalar_select %p193_p5, %s482_s12, 15 }
  0x11   : > { %s598_s13 = smov (!%p195_p6, %s486_s13), 1  ;;  %vm293_vm3 = vcmask (!%p406_p7), 523264  }
  0x12   : > { %s400_s19 = sshll.u32 %s194_s18, 1  ;;  %s402_s20 = sshll.u32 %s194_s18, 3 }
  0x13   : > { %s198_s21 = sadd.s32 %s400_s19, %s598_s13  ;;  %s403_s22 = sshll.u32 %s598_s13, 3 }
  0x14   : > { %s401_s23 = sshll.u32 %s198_s21, 2  ;;  %s208_s26 = scalar_lea.vmem %s586_s3, %s403_s22 }
  0x15   : > { %s200_s29 = scalar_lea.vmem %s583_s0, %s401_s23  ;;  %s204_s5 = scalar_lea.vmem %s584_s1, %s402_s20 }
  0x16   : > { %v210_v1 = vld [vmem:[%s200_s29] sm:$0x7] }
  0x17   : > { %v209_v2 = vld [vmem:[%s204_s5] sm:$0xff]  ;;  %414 = vmatpush3.msk.msra.mxu0 %vm215_vm1, %v210_v1 }
  0x18   : > { %416 = vmatmul.mubr.msk.f32.vlgmr.msra.gmra.mrb[0].mxu0 %vm211_vm2, %v209_v2 }
  0xe6   : > { %292 = sbr.rel (%p406_p7) target bundleno = 237 (0xed), region = 36 }
  0xeb   : > { %v285_v3 = vpop.f32.mrb[0].mxu0 }
  0xec   : > { %v417_v4 = vpop.f32.mrb[1].mxu0  ;;  %294 = vst.msk [vmem:[%s208_s26] sm:$0xff] (!%p406_p7), %vm293_vm3, %v285_v3 }
  0xed PF: > { %p407_p8 = scmp.le.s32.totalorder %s482_s12, 0 }
  0xee   : > { %vm301_vm4 = vcmask (!%p407_p8), 523264  }
  0xef   : > { %298 = sbr.rel (%p407_p8) target bundleno = 247 (0xf7), region = 40 }
  0xf3   : > { %v299_v5 = vld [vmem:[%s208_s26] sm:$0xff] (!%p407_p8) }
  0xf4   : > { %v300_v6 = vadd.f32 (!%p407_p8), %v299_v5, %v285_v3 }
  0xf6   : > { %302 = vst.msk [vmem:[%s208_s26] sm:$0xff] %vm301_vm4, %v300_v6 }
  0xf7 PF: > { %p408_p9 = scmp.ne.s32.totalorder %s482_s12, 15 }
  0xf8   : > { %vm311_vm6 = vcmask (!%p408_p9), 523264  }
  0xf9   : > { %306 = sbr.rel (%p408_p9) target bundleno = 258 (0x102), region = 44 }
  0xfd   : > { %v307_v7 = vld [vmem:[%s208_s26] sm:$0xff] (!%p408_p9) }
  0xfe   : > { %vm308_vm5 = vcmp.ge.f32.partialorder (!%p408_p9), %v307_v7, 0.0  ;;  %v309_v8 = vmul.f32 (!%p408_p9), 0.2, %v307_v7 }
 0x100   : > { %v310_v9 = vsel %vm308_vm5, %v307_v7, %v309_v8 }
 0x101   : > { %312 = vst.msk [vmem:[%s208_s26] sm:$0xff] %vm311_vm6, %v310_v9 }
 0x102 PF: > { %s13_s16 = sadd.s32 1, %s498_s16   ;;  %s587_s12 = smov %s490_s14 }
 0x103   : > { %p10_p10 = scmp.ge.s32.totalorder %s13_s16, 34   ;;  %s588_s13 = smov %s494_s15 }
 0x104   : > { %s589_s14 = smov %s592_s2  ;;  %s590_s15 = smov %s596_s17 }
 0x105   :  { %12 = sbr.rel (!%p10_p10) target bundleno = 3 (0x3), region = 77 }

// kernel: d_net_forward.5
= control target key start
LH: loop header
LB: loop body
LE: loop exit
PB: predicated region body
PF: predicated region fallthrough
CT: control target
= control target key end

     0   :  { %s575_s12 = smov 0   ;;  %s577_s13 = smov 0   ;;  %s654_s0 = inlined_call_operand.vmem [shape: f32[16,2,8,16], index: 0, kind: input, shape index: {}]   ;;  %s655_s1 = inlined_call_operand.vmem [shape: f32[16,16,8], index: 1, kind: input, shape index: {}]   ;;  %s656_s2 = inlined_call_operand.vmem [shape: f32[16,1], index: 2, kind: input, shape index: {}]   ;;  %s657_s3 = inlined_call_operand.vmem [shape: f32[2,16,16], index: 3, kind: output, shape index: {}]  }
   0x1   :  { %s579_s14 = smov 0   ;;  %s581_s15 = smov 0  }
   0x2   :  { %s583_s16 = smov 0  }
   0x3 LB: > { %s22_s2 = sadd.s32 1, %s545_s14  ;;  %s25_s17 = sadd.s32 1, %s549_s15  ;;  %s553_s16 = sphi %s583_s16, %s13_s16   ;;  %s549_s15 = sphi %s581_s15, %s661_s15   ;;  %s545_s14 = sphi %s579_s14, %s660_s14   ;;  %s541_s13 = sphi %s577_s13, %s659_s13   ;;  %s537_s12 = sphi %s575_s12, %s658_s12  }
   0x4   : > { %p23_p0 = scmp.ge.s32.totalorder %s22_s2, 16  ;;  %p447_p1 = scmp.ge.s32.totalorder %s553_s16, 1 }
   0x5   : > { %p164_p2 = scmp.lt.s32.totalorder %s553_s16, 33 }
   0x6   : > { %s663_s2 = smov (%p23_p0, %s22_s2), 0  ;;  %s665_s17 = smov (!%p23_p0, %s25_s17), %s549_s15 }
   0x7   : > { %p165_p3 = pnand %p447_p1, %p164_p2  ;;  %p27_p4 = scmp.ge.s32.totalorder %s665_s17, 2 }
   0x8   : > { %p196_p5 = scmp.lt.s32.totalorder (!%p165_p3), %s537_s12, 15  ;;  %p198_p6 = scmp.lt.s32.totalorder (!%p165_p3), %s541_s13, 1  ;;  %vm217_vm0 = vcmask (!%p165_p3), 64512  }
   0x9   : > { %s667_s17 = smov (%p27_p4, %s665_s17), 0  ;;  %168 = sbr.rel (%p165_p3) target bundleno = 573 (0x23d), region = 32 }
   0xa   : > { %p456_p7 = scmp.ne.s32.totalorder (!%p165_p3), %s537_s12, 0 }
  0x10   : > { %s197_s18 = scalar_select %p196_p5, %s537_s12, 15 }
  0x11   : > { %s669_s13 = smov (!%p198_p6, %s541_s13), 1  ;;  %vm303_vm1 = vcmask (!%p456_p7), 130048  }
  0x12   : > { %s448_s19 = sshll.u32 %s197_s18, 1  ;;  %s461_s20 = sshll.u32 %s197_s18, 4 }
  0x13   : > { %s201_s21 = sadd.s32 %s448_s19, %s669_s13  ;;  %s462_s22 = sshll.u32 %s669_s13, 4 }
  0x14   : > { %s449_s23 = sshll.u32 %s201_s21, 3  ;;  %s612_s26 = scalar_lea.vmem %s657_s3, %s462_s22 }
  0x15   : > { %s203_s29 = scalar_lea.vmem %s654_s0, %s449_s23  ;;  %s208_s5 = scalar_lea.vmem %s655_s1, %s461_s20 }
  0x16   : > { %v216_v0 = vld [vmem:[%s203_s29] sm:$0xff]  ;;  %v215_v2 = vld [vmem:[%s208_s5 + $0x8] sm:$0xff] }
  0x17   : > { %v214_v1 = vld [vmem:[%s208_s5] sm:$0xff]  ;;  %466 = vmatprep.subr.mxu0 %v216_v0 }
  0x18   : > { %468 = vmatprep.mubr.msk.f32.mxu0 %vm217_vm0, %v214_v1  ;;  %467 = vmatpush3.msra.mxu0 %v216_v0 }
  0x19   : > { %469 = vmatmul.mubr.msk.f32.vlgmr.msra.gmra.mrb[0].mxu0 %vm217_vm0, %v215_v2 }
  0xe7   : > { %302 = sbr.rel (%p456_p7) target bundleno = 239 (0xef), region = 36 }
  0xec   : > { %v470_v3 = vpop.f32.mrb[0].mxu0 }
  0xed   : > { %v290_v4 = vpop.f32.mrb[1].mxu0  ;;  %305 = vst.msk [vmem:[%s612_s26 + $0x8] sm:$0xff] (!%p456_p7), %vm303_vm1, %v470_v3 }
  0xee   : > { %304 = vst.msk [vmem:[%s612_s26] sm:$0xff] %vm303_vm1, %v290_v4 }
  0xef PF: > { %p457_p8 = scmp.le.s32.totalorder %s537_s12, 0 }
  0xf0   : > { %vm314_vm2 = vcmask (!%p457_p8), 130048  }
  0xf1   : > { %309 = sbr.rel (%p457_p8) target bundleno = 249 (0xf9), region = 40 }
  0xf5   : > { %v310_v5 = vld [vmem:[%s612_s26] sm:$0xff] (!%p457_p8)  ;;  %v311_v6 = vld [vmem:[%s612_s26 + $0x8] sm:$0xff] (!%p457_p8) }
  0xf6   : > { %v312_v7 = vadd.f32 (!%p457_p8), %v310_v5, %v290_v4  ;;  %v313_v8 = vadd.f32 (!%p457_p8), %v470_v3, %v311_v6 }
  0xf8   : > { %315 = vst.msk [vmem:[%s612_s26] sm:$0xff] %vm314_vm2, %v312_v7  ;;  %316 = vst.msk [vmem:[%s612_s26 + $0x8] sm:$0xff] %vm314_vm2, %v313_v8 }
  0xf9 PF: > { %p458_p9 = scmp.ne.s32.totalorder %s537_s12, 15 }
  0xfa   : > { %vm323_vm3 = vcmask (!%p458_p9), 130048  }
  0xfb   : > { %320 = sbr.rel (%p458_p9) target bundleno = 573 (0x23d), region = 44 }
  0xff   : > { %v321_v9 = vld [vmem:[%s612_s26] sm:$0xff] (!%p458_p9)  ;;  %v322_v10 = vld [vmem:[%s612_s26 + $0x8] sm:$0xff] (!%p458_p9) }
 0x100   : > { %v324_v11 = vsel (!%p458_p9), %vm323_vm3, %v321_v9, 0.0  ;;  %v327_v12 = vsel (!%p458_p9), %vm323_vm3, %v322_v10, 0.0 }
 0x101   : > { %325 = vadd.xlane.f32.xlu0 (!%p458_p9), %v324_v11 }
 0x105   : > { %328 = vadd.xlane.f32.xlu0 %v327_v12 }
 0x18e   : > { %v326_v13 = vpop.xlane.xlu0 %325 }
 0x18f   : > { %v331_v14 = vmul.f32 0.0625, %v326_v13 }
 0x191   : > { %v333_v15 = vsub.f32 %v321_v9, %v331_v14 }
 0x192   : > { %v329_v16 = vpop.xlane.xlu0 %328 }
 0x193   : > { %v332_v17 = vmul.f32 0.0625, %v329_v16  ;;  %v335_v18 = vmul.f32 %v333_v15, %v333_v15 }
 0x195   : > { %v334_v19 = vsub.f32 %v322_v10, %v332_v17  ;;  %v337_v20 = vsel %vm323_vm3, %v335_v18, 0.0 }
 0x196   : > { %338 = vadd.xlane.f32.xlu1 %v337_v20 }
 0x197   : > { %v336_v21 = vmul.f32 %v334_v19, %v334_v19 }
 0x199   : > { %v340_v22 = vsel %vm323_vm3, %v336_v21, 0.0 }
 0x19a   : > { %341 = vadd.xlane.f32.xlu1 %v340_v22 }
 0x223   : > { %v339_v23 = vpop.xlane.xlu1 %338 }
 0x224   : > { %v343_v24 = vmul.f32 0.0625, %v339_v23 }
 0x226   : > { %v345_v25 = vadd.f32 1e-05, %v343_v24 }
 0x227   : > { %v342_v26 = vpop.xlane.xlu1 %341 }
 0x228   : > { %511 = vrsqrt.f32 %v345_v25  ;;  %v344_v27 = vmul.f32 0.0625, %v342_v26 }
 0x22a   : > { %v346_v28 = vadd.f32 1e-05, %v344_v27 }
 0x22c   : > { %513 = vrsqrt.f32 %v346_v28 }
 0x232   : > { %v512_v29 = vpop.eup %511 }
 0x233   : > { %v349_v30 = vmul.f32 %v512_v29, %v333_v15 }
 0x235   : > { %vm351_vm4 = vcmp.ge.f32.partialorder %v349_v30, 0.0  ;;  %v353_v31 = vmul.f32 0.2, %v349_v30 }
 0x236   : > { %v514_v32 = vpop.eup %513 }
 0x237   : > { %v355_v33 = vsel %vm351_vm4, %v349_v30, %v353_v31  ;;  %v350_v34 = vmul.f32 %v514_v32, %v334_v19 }
 0x238   : > { %357 = vst.msk [vmem:[%s612_s26] sm:$0xff] %vm323_vm3, %v355_v33 }
 0x239   : > { %vm352_vm5 = vcmp.ge.f32.partialorder %v350_v34, 0.0  ;;  %v354_v35 = vmul.f32 0.2, %v350_v34 }
 0x23b   : > { %v356_v36 = vsel %vm352_vm5, %v350_v34, %v354_v35 }
 0x23c   : > { %358 = vst.msk [vmem:[%s612_s26 + $0x8] sm:$0xff] %vm323_vm3, %v356_v36 }
 0x23d PF: > { %s13_s16 = sadd.s32 1, %s553_s16   ;;  %s658_s12 = smov %s545_s14 }
 0x23e   : > { %p10_p10 = scmp.ge.s32.totalorder %s13_s16, 34   ;;  %s659_s13 = smov %s549_s15 }
 0x23f   : > { %s660_s14 = smov %s663_s2  ;;  %s661_s15 = smov %s667_s17 }
 0x240   :  { %12 = sbr.rel (!%p10_p10) target bundleno = 3 (0x3), region = 77 }

// kernel: d_net_forward.6
= control target key start
LH: loop header
LB: loop body
LE: loop exit
PB: predicated region body
PF: predicated region fallthrough
CT: control target
= control target key end

     0   :  { %s665_s12 = smov 0   ;;  %s667_s13 = smov 0   ;;  %s764_s0 = inlined_call_operand.vmem [shape: f32[16,2,16,4], index: 0, kind: input, shape index: {}]   ;;  %s765_s1 = inlined_call_operand.vmem [shape: f32[16,32,16], index: 1, kind: input, shape index: {}]   ;;  %s766_s2 = inlined_call_operand.vmem [shape: f32[32,1], index: 2, kind: input, shape index: {}]   ;;  %s767_s3 = inlined_call_operand.vmem [shape: f32[2,32,4], index: 3, kind: output, shape index: {}]  }
   0x1   :  { %s669_s14 = smov 0   ;;  %s671_s15 = smov 0  }
   0x2   :  { %s673_s16 = smov 0  }
   0x3 LB: > { %s22_s2 = sadd.s32 1, %s635_s14  ;;  %s25_s17 = sadd.s32 1, %s639_s15  ;;  %s643_s16 = sphi %s673_s16, %s13_s16   ;;  %s639_s15 = sphi %s671_s15, %s771_s15   ;;  %s635_s14 = sphi %s669_s14, %s770_s14   ;;  %s631_s13 = sphi %s667_s13, %s769_s13   ;;  %s627_s12 = sphi %s665_s12, %s768_s12  }
   0x4   : > { %p23_p0 = scmp.ge.s32.totalorder %s22_s2, 16  ;;  %p516_p1 = scmp.ge.s32.totalorder %s643_s16, 1 }
   0x5   : > { %p165_p2 = scmp.lt.s32.totalorder %s643_s16, 33 }
   0x6   : > { %s773_s2 = smov (%p23_p0, %s22_s2), 0  ;;  %s775_s17 = smov (!%p23_p0, %s25_s17), %s639_s15 }
   0x7   : > { %p166_p3 = pnand %p516_p1, %p165_p2  ;;  %p27_p4 = scmp.ge.s32.totalorder %s775_s17, 2 }
   0x8   : > { %p198_p5 = scmp.lt.s32.totalorder (!%p166_p3), %s627_s12, 15  ;;  %p200_p6 = scmp.lt.s32.totalorder (!%p166_p3), %s631_s13, 1  ;;  %vm223_vm0 = vcmask (!%p166_p3), 130048  }
   0x9   : > { %s777_s17 = smov (%p27_p4, %s775_s17), 0  ;;  %169 = sbr.rel (%p166_p3) target bundleno = 584 (0x248), region = 32 }
   0xa   : > { %p528_p7 = scmp.ne.s32.totalorder (!%p166_p3), %s627_s12, 0 }
  0x10   : > { %s199_s18 = scalar_select %p198_p5, %s627_s12, 15 }
  0x11   : > { %s779_s13 = smov (!%p200_p6, %s631_s13), 1  ;;  %vm325_vm1 = vcmask (!%p528_p7), 31744  }
  0x12   : > { %s518_s19 = sshll.u32 %s199_s18, 2  ;;  %s533_s20 = sshll.u32 %s199_s18, 5 }
  0x13   : > { %s517_s21 = sshll.u32 %s779_s13, 1  ;;  %s534_s22 = sshll.u32 %s779_s13, 5 }
  0x14   : > { %s204_s23 = sadd.s32 %s518_s19, %s517_s21  ;;  %s702_s26 = scalar_lea.vmem %s767_s3, %s534_s22 }
  0x15   : > { %s519_s27 = sshll.u32 %s204_s23, 3  ;;  %s211_s30 = scalar_lea.vmem %s765_s1, %s533_s20 }
  0x16   : > { %s206_s6 = scalar_lea.vmem %s764_s0, %s519_s27  ;;  %v217_v0 = vld [vmem:[%s211_s30] sm:$0xff]  ;;  %v219_v1 = vld [vmem:[%s211_s30 + $0x10] sm:$0xff]  ;;  %v218_v5 = vld [vmem:[%s211_s30 + $0x8] sm:$0xff] }
  0x17   : > { %v221_v2 = vld [vmem:[%s206_s6] sm:$0xff]  ;;  %v222_v3 = vld [vmem:[%s206_s6 + $0x8] sm:$0xff]  ;;  %545 = vmatprep.mubr.msk.f32.mxu0 %vm223_vm0, %v217_v0  ;;  %548 = vmatprep.mubr.msk.f32.mxu1 %vm223_vm0, %v219_v1  ;;  %v220_v6 = vld [vmem:[%s211_s30 + $0x18] sm:$0xff] }
  0x18   : > { %v551_v4 = vpack.c.bf16 %v222_v3, %v221_v2 }
  0x1a   : > { %552 = vmatprep.subr.bf16.mxu0 %v551_v4  ;;  %555 = vmatprep.subr.bf16.mxu1 %v551_v4 }
  0x1b   : > { %554 = vmatpush3.bf16.msra.mxu0 %v551_v4  ;;  %556 = vmatpush3.bf16.msra.mxu1 %v551_v4 }
  0x1e   : > { %546 = vmatmul.mubr.msk.f32.vlgmr.msra.gmra.mrb[0].mxu0 %vm223_vm0, %v218_v5  ;;  %549 = vmatmul.mubr.msk.f32.vlgmr.msra.gmra.mrb[0].mxu1 %vm223_vm0, %v220_v6 }
  0xec   : > { %324 = sbr.rel (%p528_p7) target bundleno = 244 (0xf4), region = 36 }
  0xf1   : > { %v547_v7 = vpop.f32.mrb[0].mxu0  ;;  %v550_v8 = vpop.f32.mrb[0].mxu1 }
  0xf2   : > { %v302_v9 = vpop.f32.mrb[1].mxu0  ;;  %v312_v10 = vpop.f32.mrb[1].mxu1  ;;  %327 = vst.msk [vmem:[%s702_s26 + $0x8] sm:$0xff] (!%p528_p7), %vm325_vm1, %v547_v7  ;;  %329 = vst.msk [vmem:[%s702_s26 + $0x18] sm:$0xff] (!%p528_p7), %vm325_vm1, %v550_v8 }
  0xf3   : > { %326 = vst.msk [vmem:[%s702_s26] sm:$0xff] %vm325_vm1, %v302_v9  ;;  %328 = vst.msk [vmem:[%s702_s26 + $0x10] sm:$0xff] %vm325_vm1, %v312_v10 }
  0xf4 PF: > { %p529_p8 = scmp.le.s32.totalorder %s627_s12, 0 }
  0xf5   : > { %vm342_vm2 = vcmask (!%p529_p8), 31744  }
  0xf6   : > { %333 = sbr.rel (%p529_p8) target bundleno = 255 (0xff), region = 40 }
  0xfa   : > { %v334_v11 = vld [vmem:[%s702_s26] sm:$0xff] (!%p529_p8)  ;;  %v335_v12 = vld [vmem:[%s702_s26 + $0x8] sm:$0xff] (!%p529_p8)  ;;  %v336_v13 = vld [vmem:[%s702_s26 + $0x10] sm:$0xff] (!%p529_p8) }
  0xfb   : > { %v338_v14 = vadd.f32 (!%p529_p8), %v334_v11, %v302_v9  ;;  %v339_v15 = vadd.f32 (!%p529_p8), %v547_v7, %v335_v12  ;;  %v340_v16 = vadd.f32 (!%p529_p8), %v336_v13, %v312_v10  ;;  %v337_v17 = vld [vmem:[%s702_s26 + $0x18] sm:$0xff] (!%p529_p8) }
  0xfc   : > { %v341_v18 = vadd.f32 (!%p529_p8), %v550_v8, %v337_v17 }
  0xfd   : > { %343 = vst.msk [vmem:[%s702_s26] sm:$0xff] %vm342_vm2, %v338_v14  ;;  %344 = vst.msk [vmem:[%s702_s26 + $0x8] sm:$0xff] %vm342_vm2, %v339_v15 }
  0xfe   : > { %345 = vst.msk [vmem:[%s702_s26 + $0x10] sm:$0xff] %vm342_vm2, %v340_v16  ;;  %346 = vst.msk [vmem:[%s702_s26 + $0x18] sm:$0xff] %vm342_vm2, %v341_v18 }
  0xff PF: > { %p530_p9 = scmp.ne.s32.totalorder %s627_s12, 15 }
 0x100   : > { %vm355_vm3 = vcmask (!%p530_p9), 31744  }
 0x101   : > { %350 = sbr.rel (%p530_p9) target bundleno = 584 (0x248), region = 44 }
 0x105   : > { %v353_v20 = vld [vmem:[%s702_s26 + $0x10] sm:$0xff] (!%p530_p9)  ;;  %v354_v24 = vld [vmem:[%s702_s26 + $0x18] sm:$0xff] (!%p530_p9) }
 0x106   : > { %v351_v19 = vld [vmem:[%s702_s26] sm:$0xff] (!%p530_p9)  ;;  %v352_v21 = vld [vmem:[%s702_s26 + $0x8] sm:$0xff] (!%p530_p9)  ;;  %v362_v23 = vsel (!%p530_p9), %vm355_vm3, %v353_v20, 0.0  ;;  %v365_v26 = vsel (!%p530_p9), %vm355_vm3, %v354_v24, 0.0 }
 0x107   : > { %v356_v22 = vsel (!%p530_p9), %vm355_vm3, %v351_v19, 0.0  ;;  %363 = vadd.xlane.f32.xlu1 (!%p530_p9), %v362_v23  ;;  %v359_v25 = vsel (!%p530_p9), %vm355_vm3, %v352_v21, 0.0 }
 0x108   : > { %357 = vadd.xlane.f32.xlu0 %v356_v22 }
 0x10b   : > { %366 = vadd.xlane.f32.xlu1 %v365_v26 }
 0x10c   : > { %360 = vadd.xlane.f32.xlu0 %v359_v25 }
 0x194   : > { %v364_v28 = vpop.xlane.xlu1 %363 }
 0x195   : > { %v358_v27 = vpop.xlane.xlu0 %357  ;;  %v371_v30 = vmul.f32 0.25, %v364_v28 }
 0x196   : > { %v369_v29 = vmul.f32 0.25, %v358_v27 }
 0x197   : > { %v375_v32 = vsub.f32 %v353_v20, %v371_v30 }
 0x198   : > { %v373_v31 = vsub.f32 %v351_v19, %v369_v29  ;;  %v367_v34 = vpop.xlane.xlu1 %366 }
 0x199   : > { %v361_v33 = vpop.xlane.xlu0 %360  ;;  %v372_v36 = vmul.f32 0.25, %v367_v34  ;;  %v379_v38 = vmul.f32 %v375_v32, %v375_v32 }
 0x19a   : > { %v370_v35 = vmul.f32 0.25, %v361_v33  ;;  %v377_v37 = vmul.f32 %v373_v31, %v373_v31 }
 0x19b   : > { %v376_v40 = vsub.f32 %v354_v24, %v372_v36  ;;  %v387_v42 = vsel %vm355_vm3, %v379_v38, 0.0 }
 0x19c   : > { %v374_v39 = vsub.f32 %v352_v21, %v370_v35  ;;  %v381_v41 = vsel %vm355_vm3, %v377_v37, 0.0 }
 0x19d   : > { %382 = vadd.xlane.f32.xlu0 %v381_v41  ;;  %v380_v44 = vmul.f32 %v376_v40, %v376_v40 }
 0x19e   : > { %v378_v43 = vmul.f32 %v374_v39, %v374_v39 }
 0x19f   : > { %v390_v46 = vsel %vm355_vm3, %v380_v44, 0.0 }
 0x1a0   : > { %v384_v45 = vsel %vm355_vm3, %v378_v43, 0.0 }
 0x1a1   : > { %388 = vadd.xlane.f32.xlu0 %v387_v42  ;;  %385 = vadd.xlane.f32.xlu1 %v384_v45 }
 0x1a5   : > { %391 = vadd.xlane.f32.xlu1 %v390_v46 }
 0x22a   : > { %v383_v47 = vpop.xlane.xlu0 %382 }
 0x22b   : > { %v393_v48 = vmul.f32 0.25, %v383_v47 }
 0x22d   : > { %v397_v49 = vadd.f32 1e-05, %v393_v48 }
 0x22e   : > { %v386_v50 = vpop.xlane.xlu1 %385  ;;  %v389_v51 = vpop.xlane.xlu0 %388 }
 0x22f   : > { %597 = vrsqrt.f32 %v397_v49  ;;  %v394_v52 = vmul.f32 0.25, %v386_v50  ;;  %v395_v53 = vmul.f32 0.25, %v389_v51 }
 0x231   : > { %v398_v54 = vadd.f32 1e-05, %v394_v52  ;;  %v399_v55 = vadd.f32 1e-05, %v395_v53 }
 0x232   : > { %v392_v56 = vpop.xlane.xlu1 %391 }
 0x233   : > { %599 = vrsqrt.f32 %v398_v54  ;;  %v396_v57 = vmul.f32 0.25, %v392_v56 }
 0x234   : > { %601 = vrsqrt.f32 %v399_v55 }
 0x235   : > { %v400_v58 = vadd.f32 1e-05, %v396_v57 }
 0x237   : > { %603 = vrsqrt.f32 %v400_v58 }
 0x239   : > { %v598_v59 = vpop.eup %597 }
 0x23a   : > { %v405_v60 = vmul.f32 %v598_v59, %v373_v31 }
 0x23c   : > { %vm409_vm4 = vcmp.ge.f32.partialorder %v405_v60, 0.0  ;;  %v413_v61 = vmul.f32 0.2, %v405_v60 }
 0x23d   : > { %v600_v62 = vpop.eup %599 }
 0x23e   : > { %v602_v63 = vpop.eup %601  ;;  %v417_v0 = vsel %vm409_vm4, %v405_v60, %v413_v61  ;;  %v406_v1 = vmul.f32 %v600_v62, %v374_v39 }
 0x23f   : > { %421 = vst.msk [vmem:[%s702_s26] sm:$0xff] %vm355_vm3, %v417_v0  ;;  %v407_v2 = vmul.f32 %v602_v63, %v375_v32 }
 0x240   : > { %vm410_vm5 = vcmp.ge.f32.partialorder %v406_v1, 0.0  ;;  %v414_v3 = vmul.f32 0.2, %v406_v1 }
 0x241   : > { %v604_v4 = vpop.eup %603  ;;  %vm411_vm6 = vcmp.ge.f32.partialorder %v407_v2, 0.0  ;;  %v415_v5 = vmul.f32 0.2, %v407_v2 }
 0x242   : > { %v418_v6 = vsel %vm410_vm5, %v406_v1, %v414_v3  ;;  %v408_v7 = vmul.f32 %v604_v4, %v376_v40 }
 0x243   : > { %422 = vst.msk [vmem:[%s702_s26 + $0x8] sm:$0xff] %vm355_vm3, %v418_v6  ;;  %v419_v8 = vsel %vm411_vm6, %v407_v2, %v415_v5 }
 0x244   : > { %423 = vst.msk [vmem:[%s702_s26 + $0x10] sm:$0xff] %vm355_vm3, %v419_v8  ;;  %vm412_vm7 = vcmp.ge.f32.partialorder %v408_v7, 0.0  ;;  %v416_v9 = vmul.f32 0.2, %v408_v7 }
 0x246   : > { %v420_v10 = vsel %vm412_vm7, %v408_v7, %v416_v9 }
 0x247   : > { %424 = vst.msk [vmem:[%s702_s26 + $0x18] sm:$0xff] %vm355_vm3, %v420_v10 }
 0x248 PF: > { %s13_s16 = sadd.s32 1, %s643_s16   ;;  %s768_s12 = smov %s635_s14 }
 0x249   : > { %p10_p10 = scmp.ge.s32.totalorder %s13_s16, 34   ;;  %s769_s13 = smov %s639_s15 }
 0x24a   : > { %s770_s14 = smov %s773_s2  ;;  %s771_s15 = smov %s777_s17 }
 0x24b   :  { %12 = sbr.rel (!%p10_p10) target bundleno = 3 (0x3), region = 77 }

// kernel: d_net_forward.7
= control target key start
LH: loop header
LB: loop body
LE: loop exit
PB: predicated region body
PF: predicated region fallthrough
CT: control target
= control target key end

     0   :  { %s532_s14 = smov 0   ;;  %s534_s15 = smov 0   ;;  %s600_s0 = inlined_call_operand.vmem [shape: f32[16,2,32,1], index: 0, kind: input, shape index: {}]   ;;  %s601_s1 = inlined_call_operand.vmem [shape: f32[16,1,32], index: 1, kind: input, shape index: {}]   ;;  %s602_s2 = inlined_call_operand.<no memory space> [shape: f32[1,1], index: 2, kind: input, shape index: {}]   ;;  %s603_s3 = inlined_call_operand.vmem [shape: f32[2,1,1], index: 3, kind: output, shape index: {}]  }
   0x1   :  { %v8_v0 = vstv %s602_s2  ;;  %s536_s16 = smov 0   ;;  %s538_s17 = smov 0  }
   0x2   :  { %9 = vst [vmem:[#allocation2] sm:$0x1] %v8_v0  ;;  %s540_s18 = smov 0  }
   0x3 LB: > { %s24_s2 = sadd.s32 1, %s496_s16  ;;  %s27_s19 = sadd.s32 1, %s500_s17  ;;  %s504_s18 = sphi %s540_s18, %s15_s18   ;;  %s500_s17 = sphi %s538_s17, %s607_s17   ;;  %s496_s16 = sphi %s536_s16, %s606_s16   ;;  %s492_s15 = sphi %s534_s15, %s605_s15   ;;  %s488_s14 = sphi %s532_s14, %s604_s14  }
   0x4   : > { %p25_p0 = scmp.ge.s32.totalorder %s24_s2, 16  ;;  %p391_p1 = scmp.ge.s32.totalorder %s504_s18, 1 }
   0x5   : > { %p165_p2 = scmp.lt.s32.totalorder %s504_s18, 33 }
   0x6   : > { %s609_s2 = smov (%p25_p0, %s24_s2), 0  ;;  %s611_s19 = smov (!%p25_p0, %s27_s19), %s500_s17 }
   0x7   : > { %p166_p3 = pnand %p391_p1, %p165_p2  ;;  %p29_p4 = scmp.ge.s32.totalorder %s611_s19, 2 }
   0x8   : > { %p194_p5 = scmp.lt.s32.totalorder (!%p166_p3), %s488_s14, 15  ;;  %p196_p6 = scmp.lt.s32.totalorder (!%p166_p3), %s492_s15, 1  ;;  %v506_v1 = vmov (!%p166_p3), 0.0|0.0   ;;  %vm507_vm0 = vmmov (!%p166_p3), 0   ;;  %v508_v2 = vmov (!%p166_p3), 0.0   ;;  %vm214_vm1 = vcmask (!%p166_p3), 261120  }
   0x9   : > { %s613_s19 = smov (%p29_p4, %s611_s19), 0  ;;  %169 = sbr.rel (%p166_p3) target bundleno = 265 (0x109), region = 32 }
   0xa   : > { %417 = vmatprep.subr.bf16.mxu0 (!%p166_p3), %v506_v1  ;;  %414 = vmatprep.mubr.msk.f32.mxu0 (!%p166_p3), %vm507_vm0, %v508_v2  ;;  %p396_p7 = scmp.ne.s32.totalorder (!%p166_p3), %s488_s14, 0 }
  0x10   : > { %s195_s20 = scalar_select %p194_p5, %s488_s14, 15 }
  0x11   : > { %s615_s15 = smov (!%p196_p6, %s492_s15), 1  ;;  %vm292_vm2 = vcmask (!%p396_p7), 0  }
  0x12   : > { %s393_s21 = sshll.u32 %s195_s20, 3  ;;  %s392_s22 = sshll.u32 %s615_s15, 2 }
  0x13   : > { %s569_s25 = scalar_lea.vmem %s603_s3, %s615_s15  ;;  %s200_s26 = sadd.s32 %s393_s21, %s392_s22 }
  0x14   : > { %s394_s27 = sshll.u32 %s200_s26, 3  ;;  %s205_s6 = scalar_lea.vmem %s601_s1, %s195_s20 }
  0x15   : > { %s202_s30 = scalar_lea.vmem %s600_s0, %s394_s27  ;;  %v209_v9 = vld [vmem:[%s205_s6] sm:$0x1] }
  0x16   : > { %v210_v3 = vld [vmem:[%s202_s30] sm:$0xff]  ;;  %v211_v4 = vld [vmem:[%s202_s30 + $0x8] sm:$0xff]  ;;  %v212_v5 = vld [vmem:[%s202_s30 + $0x10] sm:$0xff] }
  0x17   : > { %v418_v6 = vpack.c.bf16 %v211_v4, %v210_v3  ;;  %v213_v7 = vld [vmem:[%s202_s30 + $0x18] sm:$0xff] }
  0x18   : > { %v421_v8 = vpack.c.bf16 %v213_v7, %v212_v5 }
  0x19   : > { %419 = vmatpush3.bf16.msra.mxu0 %v418_v6 }
  0x1a   : > { %420 = vmatprep.subr.bf16.mxu0 %v506_v1 }
  0x1d   : > { %422 = vmatpush3.bf16.msra.mxu0 %v421_v8 }
  0x20   : > { %415 = vmatmul.mubr.msk.f32.vlgmr.msra.gmra.mrb[0].mxu0 %vm214_vm1, %v209_v9 }
  0xee   : > { %291 = sbr.rel (%p396_p7) target bundleno = 245 (0xf5), region = 36 }
  0xf3   : > { %v284_v10 = vpop.f32.mrb[0].mxu0 }
  0xf4   : > { %v416_v11 = vpop.f32.mrb[1].mxu0  ;;  %293 = vst.msk [vmem:[%s569_s25] sm:$0x1] (!%p396_p7), %vm292_vm2, %v284_v10 }
  0xf5 PF: > { %p397_p8 = scmp.le.s32.totalorder %s488_s14, 0 }
  0xf6   : > { %vm300_vm3 = vcmask (!%p397_p8), 0  }
  0xf7   : > { %297 = sbr.rel (%p397_p8) target bundleno = 255 (0xff), region = 40 }
  0xfb   : > { %v298_v12 = vld [vmem:[%s569_s25] sm:$0x1] (!%p397_p8) }
  0xfc   : > { %v299_v13 = vadd.f32 (!%p397_p8), %v298_v12, %v284_v10 }
  0xfe   : > { %301 = vst.msk [vmem:[%s569_s25] sm:$0x1] %vm300_vm3, %v299_v13 }
  0xff PF: > { %p398_p9 = scmp.ne.s32.totalorder %s488_s14, 15 }
 0x100   : > { %v307_v15 = vld [vmem:[#allocation2] sm:$0x1] (!%p398_p9)  ;;  %vm309_vm4 = vcmask (!%p398_p9), 0  }
 0x101   : > { %305 = sbr.rel (%p398_p9) target bundleno = 265 (0x109), region = 44 }
 0x105   : > { %v306_v14 = vld [vmem:[%s569_s25] sm:$0x1] (!%p398_p9) }
 0x106   : > { %v308_v16 = vadd.f32 (!%p398_p9), %v307_v15, %v306_v14 }
 0x108   : > { %310 = vst.msk [vmem:[%s569_s25] sm:$0x1] %vm309_vm4, %v308_v16 }
 0x109 PF: > { %s15_s18 = sadd.s32 1, %s504_s18   ;;  %s604_s14 = smov %s496_s16 }
 0x10a   : > { %p12_p10 = scmp.ge.s32.totalorder %s15_s18, 34   ;;  %s605_s15 = smov %s500_s17 }
 0x10b   : > { %s606_s16 = smov %s609_s2  ;;  %s607_s17 = smov %s613_s19 }
 0x10c   :  { %14 = sbr.rel (!%p12_p10) target bundleno = 3 (0x3), region = 77 }

</bundles_post_ra>
